<compile_context>
chip_gen: v5e
topology: v5e:2x2
jax: 0.10.0
libtpu: 0.0.40
codegen_flags: <defaults>
</compile_context>

<pallas_src>
import numpy as np
import jax
import jax.numpy as jnp
from jax.experimental import pallas as pl
from jax.experimental.pallas import tpu as pltpu

LN_EPS = 1e-5
BN_EPS = 1e-5


# ---------------------------------------------------------------------------
# DCT matrices (torch_dct, norm=None):  dct(x)_k = 2 * sum_n x_n cos(pi(2n+1)k/2N)
# idct is the functional inverse of dct, so we use the matrix inverse.
# ---------------------------------------------------------------------------
def dct_matrix(N):
    n = np.arange(N, dtype=np.float64)
    k = np.arange(N, dtype=np.float64)
    return 2.0 * np.cos(np.pi * (2.0 * n[None, :] + 1.0) * k[:, None] / (2.0 * N))


# ---------------------------------------------------------------------------
# Fused Pallas kernel: the entire forward pass in a single invocation.
# ---------------------------------------------------------------------------
def make_fused_kernel(m_layers, d_model):
    inv_d = 1.0 / float(d_model)

    def kernel(x_ref,                              # (B*C, L)          VMEM
               wup_ref, bup_ref,                   # (L, D), (1, D)    VMEM (DCT folded)
               wc_ref, bc_ref, lng_ref, lnb_ref,   # (m,D,D), 3x(m,1,D) VMEM
               wblk_ref, shc_ref,                  # (m,BC,BC), (m,BC,1) VMEM (pwconv fold)
               wdn_ref, bdn_ref,                   # (D, T), (1, T)    VMEM (IDCT folded)
               o_ref):                             # (B*C, T)          VMEM
        # --- dct(x) then up(): pre-folded, one (B*C, L) @ (L, D) matmul ---
        h = jnp.dot(x_ref[...], wup_ref[...],
                    preferred_element_type=jnp.float32) + bup_ref[...]

        for l in range(m_layers):                  # static unroll (m is small)
            # convs[l]: Linear(D, D)
            h = jnp.dot(h, wc_ref[l], preferred_element_type=jnp.float32) + bc_ref[l]

            # eval-dropout residual (2x) followed by LayerNorm(eps) is EXACTLY
            # LayerNorm(h, eps/4): (2h-2mu)*rsqrt(4var+eps) == (h-mu)*rsqrt(var+eps/4).
            # One-pass stats: two independent XLU reductions overlap on the
            # critical path instead of reduce -> subtract -> reduce.
            s1 = jnp.sum(h, axis=-1, keepdims=True)
            s2 = jnp.sum(h * h, axis=-1, keepdims=True)
            mu = s1 * inv_d
            var = s2 * inv_d - mu * mu
            h = (h - mu) * jax.lax.rsqrt(var + LN_EPS * 0.25)
            h = h * lng_ref[l] + lnb_ref[l]

            # pwconvs[l] (Conv1d(C,C,1) + bias) + dropout residual (2x) + bnv[l]
            # (eval BatchNorm1d affine), all folded offline into one block-diagonal
            # (B*C, B*C) matmul + (B*C, 1) shift.  Block structure keeps channel
            # mixing within each batch element in the merged (B*C, D) layout.
            h = jnp.dot(wblk_ref[l], h, preferred_element_type=jnp.float32) + shc_ref[l]

        # --- down() then idct(): pre-folded, one (B*C, D) @ (D, T) matmul ---
        # TODO(synk): output last dim T=8 < 128 -> masked store; lane-dense repack
        # only worth it once target_window / batching grows.
        o_ref[...] = jnp.dot(h, wdn_ref[...],
                             preferred_element_type=jnp.float32) + bdn_ref[...]

    return kernel


# ---------------------------------------------------------------------------
# Wrapper: one pallas_call, no grid (single tiny work item; activation never
# leaves VMEM between layers).  If throughput over many sequences mattered, a
# "parallel" grid over M tiles (>=128 rows) would be added here.
# ---------------------------------------------------------------------------
def variable_forward(x, fused):
    B, C, L = x.shape
    D = fused["w_up_f"].shape[1]
    T = fused["w_down_f"].shape[1]
    m = fused["wc_all"].shape[0]
    BC = B * C
    assert fused["wblk_all"].shape == (m, BC, BC), "params built for a different batch"

    vmem = pl.BlockSpec(memory_space=pltpu.MemorySpace.VMEM)

    out = pl.pallas_call(
        make_fused_kernel(m, D),
        out_shape=jax.ShapeDtypeStruct((BC, T), jnp.float32),
        in_specs=[vmem, vmem, vmem,            # x, w_up_f, b_up
                  vmem, vmem, vmem, vmem,      # wc_all, bc_all, lng_all, lnb_all
                  vmem, vmem,                  # wblk_all, shc_all
                  vmem, vmem],                 # w_down_f, b_down_f
        out_specs=vmem,
    )(x.reshape(BC, L),
      fused["w_up_f"], fused["b_up"],
      fused["wc_all"], fused["bc_all"], fused["lng_all"], fused["lnb_all"],
      fused["wblk_all"], fused["shc_all"],
      fused["w_down_f"], fused["b_down_f"])
    return out.reshape(B, C, T)


# ---------------------------------------------------------------------------
# Pure-JAX reference (unfused / unfolded math) for the sanity check
# ---------------------------------------------------------------------------
def reference(x, raw):
    h = jnp.einsum("bcl,lm->bcm", x, raw["cdct_t"])
    h = h @ raw["w_up"] + raw["b_up"]
    for lp in raw["layers"]:
        h = h @ lp["wc"] + lp["bc"]
        h = 2.0 * h
        mu = h.mean(-1, keepdims=True)
        var = ((h - mu) ** 2).mean(-1, keepdims=True)
        h = (h - mu) / jnp.sqrt(var + LN_EPS) * lp["ln_g"] + lp["ln_b"]
        h = jnp.einsum("oc,bcd->bod", lp["wp"], h) + lp["bp"][None]
        h = 2.0 * h
        h = h * lp["bn_s"][None] + lp["bn_sh"][None]
    h = h @ raw["w_down"] + raw["b_down"]
    h = h @ raw["didct"]
    return h


# ---------------------------------------------------------------------------
# Deterministic parameter construction (PyTorch-default-style init) + folds
# ---------------------------------------------------------------------------
def make_params(key, context_window, target_window, d_model, c_in, m_layers, batch):
    keys = jax.random.split(key, 4 + 4 * m_layers)
    ki = iter(range(len(keys)))

    def uni(k, shape, fan_in):
        bound = 1.0 / np.sqrt(fan_in)
        return jax.random.uniform(k, shape, jnp.float32, -bound, bound)

    Cd_L = dct_matrix(context_window)
    Cd_T = dct_matrix(target_window)
    cdct_t = jnp.asarray(Cd_L.T, jnp.float32)                 # x @ cdct_t == dct(x)
    didct = jnp.asarray(np.linalg.inv(Cd_T.T), jnp.float32)   # y @ didct  == idct(y)

    w_up = uni(keys[next(ki)], (context_window, d_model), context_window)
    b_up = uni(keys[next(ki)], (1, d_model), context_window)
    w_down = uni(keys[next(ki)], (d_model, target_window), d_model)
    b_down = uni(keys[next(ki)], (1, target_window), d_model)

    raw = {"cdct_t": cdct_t, "didct": didct, "w_up": w_up, "b_up": b_up,
           "w_down": w_down, "b_down": b_down, "layers": []}

    eye_b = jnp.eye(batch, dtype=jnp.float32)
    wc_l, bc_l, lng_l, lnb_l, wblk_l, shc_l = [], [], [], [], [], []
    for _ in range(m_layers):
        wc = uni(keys[next(ki)], (d_model, d_model), d_model)
        bc = uni(keys[next(ki)], (1, d_model), d_model)
        wp = uni(keys[next(ki)], (c_in, c_in), c_in)       # Conv1d(c_in,c_in,1) weight
        bp = uni(keys[next(ki)], (c_in, 1), c_in)
        ln_g = jnp.ones((1, d_model), jnp.float32)
        ln_b = jnp.zeros((1, d_model), jnp.float32)
        bn_gamma = jnp.ones((c_in, 1), jnp.float32)
        bn_beta = jnp.zeros((c_in, 1), jnp.float32)
        run_mean = jnp.zeros((c_in, 1), jnp.float32)
        run_var = jnp.ones((c_in, 1), jnp.float32)
        bn_s = bn_gamma / jnp.sqrt(run_var + BN_EPS)       # BatchNorm1d eval affine
        bn_sh = bn_beta - run_mean * bn_s
        raw["layers"].append(dict(wc=wc, bc=bc, ln_g=ln_g, ln_b=ln_b,
                                  wp=wp, bp=bp, bn_s=bn_s, bn_sh=bn_sh))

        # Exact fold of (Conv1d bias + eval-dropout 2x + BatchNorm affine):
        #   out[o,:] = sum_c (2*bn_s[o]*wp[o,c]) * h[c,:] + (2*bn_s[o]*bp[o] + bn_sh[o])
        wp_eff = (2.0 * bn_s) * wp                         # (C, C)
        sh_eff = 2.0 * bn_s * bp + bn_sh                   # (C, 1)
        # Block-diagonal form over the merged (B*C) row axis: kron(I_B, wp_eff).
        wblk = jnp.kron(eye_b, wp_eff)                     # (B*C, B*C)
        shc = jnp.tile(sh_eff, (batch, 1))                 # (B*C, 1)

        wc_l.append(wc); bc_l.append(bc); lng_l.append(ln_g); lnb_l.append(ln_b)
        wblk_l.append(wblk); shc_l.append(shc)

    fused = {
        "w_up_f": cdct_t @ w_up,            # DCT folded into up-projection (L, D)
        "b_up": b_up,                       # (1, D)
        "wc_all": jnp.stack(wc_l),          # (m, D, D)
        "bc_all": jnp.stack(bc_l),          # (m, 1, D)
        "lng_all": jnp.stack(lng_l),        # (m, 1, D)
        "lnb_all": jnp.stack(lnb_l),        # (m, 1, D)
        "wblk_all": jnp.stack(wblk_l),      # (m, B*C, B*C) block-diag channel mix
        "shc_all": jnp.stack(shc_l),        # (m, B*C, 1)   folded shift
        "w_down_f": w_down @ didct,         # IDCT folded into down-projection (D, T)
        "b_down_f": b_down @ didct,         # (1, T)
    }
    return raw, fused


if __name__ == "__main__":
    B, c_in, context_window, target_window, d_model, m_layers = 2, 4, 16, 8, 32, 2

    key = jax.random.PRNGKey(0)
    kx, kp = jax.random.split(key)
    x = jax.random.normal(kx, (B, c_in, context_window), dtype=jnp.float32)
    raw, fused = make_params(kp, context_window, target_window, d_model, c_in,
                             m_layers, batch=B)

    out = jax.block_until_ready(variable_forward(x, fused))
    assert out.shape == (B, c_in, target_window), out.shape

    ref = jax.block_until_ready(reference(x, raw))
    np.testing.assert_allclose(np.asarray(out), np.asarray(ref), rtol=1e-2, atol=1e-2)

    print("KERNEL_OK")
</pallas_src>

<mosaic_0001>
module attributes {stable_mosaic.version = 11 : i64} {
  func.func @kernel(%arg0: memref<8x16xf32, #tpu.memory_space<vmem>>, %arg1: memref<16x32xf32, #tpu.memory_space<vmem>>, %arg2: memref<1x32xf32, #tpu.memory_space<vmem>>, %arg3: memref<2x32x32xf32, #tpu.memory_space<vmem>>, %arg4: memref<2x1x32xf32, #tpu.memory_space<vmem>>, %arg5: memref<2x1x32xf32, #tpu.memory_space<vmem>>, %arg6: memref<2x1x32xf32, #tpu.memory_space<vmem>>, %arg7: memref<2x8x8xf32, #tpu.memory_space<vmem>>, %arg8: memref<2x8x1xf32, #tpu.memory_space<vmem>>, %arg9: memref<32x8xf32, #tpu.memory_space<vmem>>, %arg10: memref<1x8xf32, #tpu.memory_space<vmem>>, %arg11: memref<8x8xf32, #tpu.memory_space<vmem>>) attributes {dimension_semantics = [], scalar_prefetch = 0 : i64, scratch_operands = 0 : i64, tpu.core_type = #tpu.core_type<tc>} {
    %c0 = arith.constant 0 : index
    %c0_0 = arith.constant 0 : index
    %0 = vector.load %arg0[%c0, %c0_0] : memref<8x16xf32, #tpu.memory_space<vmem>>, vector<8x16xf32>
    %c0_1 = arith.constant 0 : index
    %c0_2 = arith.constant 0 : index
    %1 = vector.load %arg1[%c0_1, %c0_2] : memref<16x32xf32, #tpu.memory_space<vmem>>, vector<16x32xf32>
    %cst = arith.constant dense<0.000000e+00> : vector<8x32xf32>
    %2 = tpu.matmul %0, %1, %cst {dimension_numbers = #tpu.dot_dimension_numbers<[1], [0], [0], [1], [0, 0, 1, 1], [], []>} : vector<8x16xf32>, vector<16x32xf32>, vector<8x32xf32> -> vector<8x32xf32>
    %c0_3 = arith.constant 0 : index
    %c0_4 = arith.constant 0 : index
    %3 = vector.load %arg2[%c0_3, %c0_4] : memref<1x32xf32, #tpu.memory_space<vmem>>, vector<1x32xf32>
    %4 = vector.broadcast %3 : vector<1x32xf32> to vector<8x32xf32>
    %5 = arith.addf %2, %4 : vector<8x32xf32>
    %c0_5 = arith.constant 0 : index
    %c0_6 = arith.constant 0 : index
    %c0_7 = arith.constant 0 : index
    %6 = vector.load %arg3[%c0_5, %c0_6, %c0_7] : memref<2x32x32xf32, #tpu.memory_space<vmem>>, vector<1x32x32xf32>
    %7 = vector.shape_cast %6 : vector<1x32x32xf32> to vector<32x32xf32>
    %cst_8 = arith.constant dense<0.000000e+00> : vector<8x32xf32>
    %8 = tpu.matmul %5, %7, %cst_8 {dimension_numbers = #tpu.dot_dimension_numbers<[1], [0], [0], [1], [0, 0, 1, 1], [], []>} : vector<8x32xf32>, vector<32x32xf32>, vector<8x32xf32> -> vector<8x32xf32>
    %c0_9 = arith.constant 0 : index
    %c0_10 = arith.constant 0 : index
    %c0_11 = arith.constant 0 : index
    %9 = vector.load %arg4[%c0_9, %c0_10, %c0_11] : memref<2x1x32xf32, #tpu.memory_space<vmem>>, vector<1x1x32xf32>
    %10 = vector.shape_cast %9 : vector<1x1x32xf32> to vector<1x32xf32>
    %11 = vector.broadcast %10 : vector<1x32xf32> to vector<8x32xf32>
    %12 = arith.addf %8, %11 : vector<8x32xf32>
    %cst_12 = arith.constant dense<0.000000e+00> : vector<8xf32>
    %13 = vector.multi_reduction <add>, %12, %cst_12 [1] : vector<8x32xf32> to vector<8xf32>
    %14 = vector.shape_cast %13 : vector<8xf32> to vector<8x1xf32>
    %15 = arith.mulf %12, %12 : vector<8x32xf32>
    %cst_13 = arith.constant dense<0.000000e+00> : vector<8xf32>
    %16 = vector.multi_reduction <add>, %15, %cst_13 [1] : vector<8x32xf32> to vector<8xf32>
    %17 = vector.shape_cast %16 : vector<8xf32> to vector<8x1xf32>
    %cst_14 = arith.constant 3.125000e-02 : f32
    %18 = vector.broadcast %cst_14 : f32 to vector<8x1xf32>
    %19 = arith.mulf %14, %18 : vector<8x1xf32>
    %cst_15 = arith.constant 3.125000e-02 : f32
    %20 = vector.broadcast %cst_15 : f32 to vector<8x1xf32>
    %21 = arith.mulf %17, %20 : vector<8x1xf32>
    %22 = arith.mulf %19, %19 : vector<8x1xf32>
    %23 = arith.subf %21, %22 : vector<8x1xf32>
    %24 = vector.broadcast %19 : vector<8x1xf32> to vector<8x32xf32>
    %25 = arith.subf %12, %24 : vector<8x32xf32>
    %cst_16 = arith.constant 2.500000e-06 : f32
    %26 = vector.broadcast %cst_16 : f32 to vector<8x1xf32>
    %27 = arith.addf %23, %26 : vector<8x1xf32>
    %28 = math.rsqrt %27 : vector<8x1xf32>
    %29 = vector.broadcast %28 : vector<8x1xf32> to vector<8x32xf32>
    %30 = arith.mulf %25, %29 : vector<8x32xf32>
    %c0_17 = arith.constant 0 : index
    %c0_18 = arith.constant 0 : index
    %c0_19 = arith.constant 0 : index
    %31 = vector.load %arg5[%c0_17, %c0_18, %c0_19] : memref<2x1x32xf32, #tpu.memory_space<vmem>>, vector<1x1x32xf32>
    %32 = vector.shape_cast %31 : vector<1x1x32xf32> to vector<1x32xf32>
    %33 = vector.broadcast %32 : vector<1x32xf32> to vector<8x32xf32>
    %34 = arith.mulf %30, %33 : vector<8x32xf32>
    %c0_20 = arith.constant 0 : index
    %c0_21 = arith.constant 0 : index
    %c0_22 = arith.constant 0 : index
    %35 = vector.load %arg6[%c0_20, %c0_21, %c0_22] : memref<2x1x32xf32, #tpu.memory_space<vmem>>, vector<1x1x32xf32>
    %36 = vector.shape_cast %35 : vector<1x1x32xf32> to vector<1x32xf32>
    %37 = vector.broadcast %36 : vector<1x32xf32> to vector<8x32xf32>
    %38 = arith.addf %34, %37 : vector<8x32xf32>
    %c0_23 = arith.constant 0 : index
    %c0_24 = arith.constant 0 : index
    %c0_25 = arith.constant 0 : index
    %39 = vector.load %arg7[%c0_23, %c0_24, %c0_25] : memref<2x8x8xf32, #tpu.memory_space<vmem>>, vector<1x8x8xf32>
    %40 = vector.shape_cast %39 : vector<1x8x8xf32> to vector<8x8xf32>
    %cst_26 = arith.constant dense<0.000000e+00> : vector<8x32xf32>
    %41 = tpu.matmul %40, %38, %cst_26 {dimension_numbers = #tpu.dot_dimension_numbers<[1], [0], [0], [1], [0, 0, 1, 1], [], []>} : vector<8x8xf32>, vector<8x32xf32>, vector<8x32xf32> -> vector<8x32xf32>
    %c0_27 = arith.constant 0 : index
    %c0_28 = arith.constant 0 : index
    %c0_29 = arith.constant 0 : index
    %42 = vector.load %arg8[%c0_27, %c0_28, %c0_29] : memref<2x8x1xf32, #tpu.memory_space<vmem>>, vector<1x8x1xf32>
    %43 = vector.shape_cast %42 : vector<1x8x1xf32> to vector<8x1xf32>
    %44 = vector.broadcast %43 : vector<8x1xf32> to vector<8x32xf32>
    %45 = arith.addf %41, %44 : vector<8x32xf32>
    %c1 = arith.constant 1 : index
    %c0_30 = arith.constant 0 : index
    %c0_31 = arith.constant 0 : index
    %46 = vector.load %arg3[%c1, %c0_30, %c0_31] : memref<2x32x32xf32, #tpu.memory_space<vmem>>, vector<1x32x32xf32>
    %47 = vector.shape_cast %46 : vector<1x32x32xf32> to vector<32x32xf32>
    %cst_32 = arith.constant dense<0.000000e+00> : vector<8x32xf32>
    %48 = tpu.matmul %45, %47, %cst_32 {dimension_numbers = #tpu.dot_dimension_numbers<[1], [0], [0], [1], [0, 0, 1, 1], [], []>} : vector<8x32xf32>, vector<32x32xf32>, vector<8x32xf32> -> vector<8x32xf32>
    %c1_33 = arith.constant 1 : index
    %c0_34 = arith.constant 0 : index
    %c0_35 = arith.constant 0 : index
    %49 = vector.load %arg4[%c1_33, %c0_34, %c0_35] : memref<2x1x32xf32, #tpu.memory_space<vmem>>, vector<1x1x32xf32>
    %50 = vector.shape_cast %49 : vector<1x1x32xf32> to vector<1x32xf32>
    %51 = vector.broadcast %50 : vector<1x32xf32> to vector<8x32xf32>
    %52 = arith.addf %48, %51 : vector<8x32xf32>
    %cst_36 = arith.constant dense<0.000000e+00> : vector<8xf32>
    %53 = vector.multi_reduction <add>, %52, %cst_36 [1] : vector<8x32xf32> to vector<8xf32>
    %54 = vector.shape_cast %53 : vector<8xf32> to vector<8x1xf32>
    %55 = arith.mulf %52, %52 : vector<8x32xf32>
    %cst_37 = arith.constant dense<0.000000e+00> : vector<8xf32>
    %56 = vector.multi_reduction <add>, %55, %cst_37 [1] : vector<8x32xf32> to vector<8xf32>
    %57 = vector.shape_cast %56 : vector<8xf32> to vector<8x1xf32>
    %cst_38 = arith.constant 3.125000e-02 : f32
    %58 = vector.broadcast %cst_38 : f32 to vector<8x1xf32>
    %59 = arith.mulf %54, %58 : vector<8x1xf32>
    %cst_39 = arith.constant 3.125000e-02 : f32
    %60 = vector.broadcast %cst_39 : f32 to vector<8x1xf32>
    %61 = arith.mulf %57, %60 : vector<8x1xf32>
    %62 = arith.mulf %59, %59 : vector<8x1xf32>
    %63 = arith.subf %61, %62 : vector<8x1xf32>
    %64 = vector.broadcast %59 : vector<8x1xf32> to vector<8x32xf32>
    %65 = arith.subf %52, %64 : vector<8x32xf32>
    %cst_40 = arith.constant 2.500000e-06 : f32
    %66 = vector.broadcast %cst_40 : f32 to vector<8x1xf32>
    %67 = arith.addf %63, %66 : vector<8x1xf32>
    %68 = math.rsqrt %67 : vector<8x1xf32>
    %69 = vector.broadcast %68 : vector<8x1xf32> to vector<8x32xf32>
    %70 = arith.mulf %65, %69 : vector<8x32xf32>
    %c1_41 = arith.constant 1 : index
    %c0_42 = arith.constant 0 : index
    %c0_43 = arith.constant 0 : index
    %71 = vector.load %arg5[%c1_41, %c0_42, %c0_43] : memref<2x1x32xf32, #tpu.memory_space<vmem>>, vector<1x1x32xf32>
    %72 = vector.shape_cast %71 : vector<1x1x32xf32> to vector<1x32xf32>
    %73 = vector.broadcast %72 : vector<1x32xf32> to vector<8x32xf32>
    %74 = arith.mulf %70, %73 : vector<8x32xf32>
    %c1_44 = arith.constant 1 : index
    %c0_45 = arith.constant 0 : index
    %c0_46 = arith.constant 0 : index
    %75 = vector.load %arg6[%c1_44, %c0_45, %c0_46] : memref<2x1x32xf32, #tpu.memory_space<vmem>>, vector<1x1x32xf32>
    %76 = vector.shape_cast %75 : vector<1x1x32xf32> to vector<1x32xf32>
    %77 = vector.broadcast %76 : vector<1x32xf32> to vector<8x32xf32>
    %78 = arith.addf %74, %77 : vector<8x32xf32>
    %c1_47 = arith.constant 1 : index
    %c0_48 = arith.constant 0 : index
    %c0_49 = arith.constant 0 : index
    %79 = vector.load %arg7[%c1_47, %c0_48, %c0_49] : memref<2x8x8xf32, #tpu.memory_space<vmem>>, vector<1x8x8xf32>
    %80 = vector.shape_cast %79 : vector<1x8x8xf32> to vector<8x8xf32>
    %cst_50 = arith.constant dense<0.000000e+00> : vector<8x32xf32>
    %81 = tpu.matmul %80, %78, %cst_50 {dimension_numbers = #tpu.dot_dimension_numbers<[1], [0], [0], [1], [0, 0, 1, 1], [], []>} : vector<8x8xf32>, vector<8x32xf32>, vector<8x32xf32> -> vector<8x32xf32>
    %c1_51 = arith.constant 1 : index
    %c0_52 = arith.constant 0 : index
    %c0_53 = arith.constant 0 : index
    %82 = vector.load %arg8[%c1_51, %c0_52, %c0_53] : memref<2x8x1xf32, #tpu.memory_space<vmem>>, vector<1x8x1xf32>
    %83 = vector.shape_cast %82 : vector<1x8x1xf32> to vector<8x1xf32>
    %84 = vector.broadcast %83 : vector<8x1xf32> to vector<8x32xf32>
    %85 = arith.addf %81, %84 : vector<8x32xf32>
    %c0_54 = arith.constant 0 : index
    %c0_55 = arith.constant 0 : index
    %86 = vector.load %arg9[%c0_54, %c0_55] : memref<32x8xf32, #tpu.memory_space<vmem>>, vector<32x8xf32>
    %cst_56 = arith.constant dense<0.000000e+00> : vector<8x8xf32>
    %87 = tpu.matmul %85, %86, %cst_56 {dimension_numbers = #tpu.dot_dimension_numbers<[1], [0], [0], [1], [0, 0, 1, 1], [], []>} : vector<8x32xf32>, vector<32x8xf32>, vector<8x8xf32> -> vector<8x8xf32>
    %c0_57 = arith.constant 0 : index
    %c0_58 = arith.constant 0 : index
    %88 = vector.load %arg10[%c0_57, %c0_58] : memref<1x8xf32, #tpu.memory_space<vmem>>, vector<1x8xf32>
    %89 = vector.broadcast %88 : vector<1x8xf32> to vector<8x8xf32>
    %90 = arith.addf %87, %89 : vector<8x8xf32>
    %c0_59 = arith.constant 0 : index
    %c0_60 = arith.constant 0 : index
    %91 = vector.load %arg11[%c0_59, %c0_60] : memref<8x8xf32, #tpu.memory_space<vmem>>, vector<8x8xf32>
    tpu.vector_store %arg11[%c0_59, %c0_60], %90 {strides = array<i32>} : memref<8x8xf32, #tpu.memory_space<vmem>>, vector<8x8xf32>,
    return
  }
}

</mosaic_0001>

<bundles_post_ra>
// kernel: tpu_custom_call.1
= control target key start
LH: loop header
LB: loop body
LE: loop exit
PB: predicated region body
PF: predicated region fallthrough
CT: control target
= control target key end

     0   :  { %16 = vsyncpa [#allocation3], 0  ;;  %s554_s0 = inlined_call_operand.vmem [shape: f32[8,16], index: 0, kind: input, shape index: {}]   ;;  %s555_s1 = inlined_call_operand.vmem [shape: f32[16,32], index: 1, kind: input, shape index: {}]   ;;  %s556_s2 = inlined_call_operand.vmem [shape: f32[1,32], index: 2, kind: input, shape index: {}]   ;;  %s557_s3 = inlined_call_operand.hbm [shape: f32[2,32,32], index: 3, kind: input, shape index: {}]   ;;  %s558_s4 = inlined_call_operand.vmem [shape: f32[2,1,32], index: 4, kind: input, shape index: {}]   ;;  %s559_s5 = inlined_call_operand.vmem [shape: f32[2,1,32], index: 5, kind: input, shape index: {}]   ;;  %s560_s6 = inlined_call_operand.vmem [shape: f32[2,1,32], index: 6, kind: input, shape index: {}]   ;;  %s561_s7 = inlined_call_operand.vmem [shape: f32[2,8,8], index: 7, kind: input, shape index: {}]   ;;  %s562_s8 = inlined_call_operand.vmem [shape: f32[2,8,1], index: 8, kind: input, shape index: {}]   ;;  %s563_s9 = inlined_call_operand.vmem [shape: f32[32,8], index: 9, kind: input, shape index: {}]   ;;  %s564_s10 = inlined_call_operand.vmem [shape: f32[1,8], index: 10, kind: input, shape index: {}]   ;;  %s565_s11 = inlined_call_operand.hbm [shape: f32[8,8], index: 11, kind: output, shape index: {}]  }
   0x1   :  { %17 = vsyncpa [#allocation4], 0  ;;  %s28_s19 = sshll.u32 %s557_s3, 4  ;;  %s416_s20 = smov [#allocation2]   ;;  %s29_s19 = int_to_ptr.hbm [resolvable:$true] %s28_s19 }
   0x2   :  { %s30_s21 = sshll.u32 %s416_s20, 4  ;;  %s417_s22 = smov 128   ;;  %s31_s21 = int_to_ptr.vmem [resolvable:$true] %s30_s21 }
   0x3   :  { %s418_s23 = smov 8  }
   0x4   :  { %36 = dma.hbm_to_vmem [thread:$0]  %s29_s19, 1024, %s31_s21, [#allocation3], %s417_s22, %s417_s22, %s418_s23  }
   0x5   :  { %412 = dma.done.wait [#allocation3], 1024  }
   0x6   :  { %413 = vsyncadd [#allocation3], 4294966272  ;;  %v57_v0 = vld [vmem:[%s555_s1 + $0x8] sm:$0xff]  ;;  %v56_v1 = vld [vmem:[%s555_s1] sm:$0xff]  ;;  %vm62_vm0 = vcmask 130048   ;;  %vm94_vm1 = vcmask 261120  }
   0x7   :  { %v55_v2 = vld [vmem:[%s554_s0] sm:$0xff]  ;;  %80 = vmatpush.msra.mxu0 %v57_v0  ;;  %v89_v3 = vld [vmem:[#allocation2 + $0x18] sm:$0xff]  ;;  %v88_v4 = vld [vmem:[#allocation2 + $0x10] sm:$0xff]  ;;  %v419_v24 = vmov 0   ;;  %vm159_vm5 = vcmask 64512   ;;  %s420_s12 = smov [#allocation5]  }
   0x8   :  { %110 = vmatpush.msra.mxu1 %v89_v3  ;;  %v87_v5 = vld [vmem:[#allocation2 + $0x8] sm:$0xff]  ;;  %v86_v6 = vld [vmem:[#allocation2] sm:$0xff]  ;;  %v187_v20 = vld [vmem:[#allocation2 + $0x38] sm:$0xff]  ;;  %349 = vset.pattern.permute.xlu1 %v419_v24  ;;  %s321_s13 = sshll.u32 %s420_s12, 4  ;;  %s323_s15 = sshll.u32 %s565_s11, 4  ;;  %s322_s13 = int_to_ptr.vmem [resolvable:$true] %s321_s13  ;;  %s324_s15 = int_to_ptr.hbm [resolvable:$true] %s323_s15 }
   0x9   :  { %81 = vmatpush.msra.mxu0 %v56_v1  ;;  %v352_v7 = vld [vmem:[%s556_s2] ss:$0 sm:$0xff]  ;;  %v186_v21 = vld [vmem:[#allocation2 + $0x30] sm:$0xff]  ;;  %208 = vmatpush.msra.mxu3 %v187_v20  ;;  %v185_v25 = vld [vmem:[#allocation2 + $0x28] sm:$0xff] }
   0xa   :  { %333 = vmatmul.msk.f32.vlgmr.msra.gmra.mxu0 %vm62_vm0, %v55_v2  ;;  %111 = vmatpush.msra.mxu1 %v88_v4  ;;  %v353_v10 = vld [vmem:[%s558_s4] ss:$0 sm:$0xff]  ;;  %v356_v46 = vld [vmem:[%s558_s4 + $0x1] ss:$0 sm:$0xff]  ;;  %v341_v55 = vld [vmem:[%s562_s8 + $0x8] sm:$0xff] }
   0xb   :  { %v153_v19 = vld [vmem:[%s562_s8] sm:$0xff]  ;;  %350 = vset.pattern.permute.xlu2 %v419_v24  ;;  %209 = vmatpush.msra.mxu3 %v186_v21  ;;  %v287_v56 = vld [vmem:[%s563_s9 + $0x18] sm:$0xff]  ;;  %v286_v57 = vld [vmem:[%s563_s9 + $0x10] sm:$0xff] }
   0xc   :  { %112 = vmatpush.msra.mxu1 %v87_v5  ;;  %156 = vperm.xlu1 %349, %v153_v19   ;;  %v354_v35 = vld [vmem:[%s559_s5] ss:$0 sm:$0xff]  ;;  %v285_v60 = vld [vmem:[%s563_s9 + $0x8] sm:$0xff] }
   0xd   :  { %351 = vset.pattern.permute.xlu0 %v419_v24  ;;  %210 = vmatpush.msra.mxu3 %v185_v25  ;;  %v355_v38 = vld [vmem:[%s560_s6] ss:$0 sm:$0xff] }
   0xe   :  { %113 = vmatpush.msra.mxu1 %v86_v6  ;;  %v152_v41 = vld [vmem:[%s561_s7] sm:$0xff]  ;;  %307 = vmatpush.msrb.mxu0 %v287_v56 }
   0xf   :  { %v184_v42 = vld [vmem:[#allocation2 + $0x20] sm:$0xff] }
  0x10   :  { %211 = vmatpush.msra.mxu3 %v184_v42  ;;  %308 = vmatpush.msrb.mxu0 %v286_v57  ;;  %v357_v6 = vld [vmem:[%s559_s5 + $0x1] ss:$0 sm:$0xff] }
  0x12   :  { %309 = vmatpush.msrb.mxu0 %v285_v60 }
  0x7e   :  { %v157_v43 = vpop.permute.xlu1 %156 }
  0x87   :  { %v83_v8 = vpop.f32.mrf.mxu0 }
  0x88   :  { %v84_v9 = vadd.f32 %v352_v7, %v83_v8 }
  0x8a   :  { %334 = vmatmul.msk.f32.vlgmr.msra.gmra.mxu1 %vm94_vm1, %v84_v9  ;;  %v358_v9 = vld [vmem:[%s560_s6 + $0x1] ss:$0 sm:$0xff] }
 0x107   :  { %v115_v11 = vpop.f32.mrf.mxu1 }
 0x108   :  { %v116_v12 = vadd.f32 %v353_v10, %v115_v11 }
 0x10a   :  { %v118_v13 = vsel %vm94_vm1, %v116_v12, 0.0  ;;  %v121_v14 = vmul.f32 %v116_v12, %v116_v12 }
 0x10b   :  { %119 = vadd.xlane.f32.xlu0 %v118_v13  ;;  %v284_v13 = vld [vmem:[%s563_s9] sm:$0xff] }
 0x10c   :  { %v122_v15 = vsel %vm94_vm1, %v121_v14, 0.0  ;;  %310 = vmatpush.msrb.mxu0 %v284_v13 }
 0x113   :  { %123 = vadd.xlane.f32.xlu0 %v122_v15 }
 0x17e   :  { %v120_v16 = vpop.xlane.xlu0 %119 }
 0x17f   :  { %v125_v17 = vmul.f32 0.03125, %v120_v16 }
 0x181   :  { %v127_v22 = vmul.f32 %v125_v17, %v125_v17  ;;  %v129_v34 = vsub.f32 %v116_v12, %v125_v17  ;;  %v340_v12 = vld [vmem:[%s561_s7 + $0x8] sm:$0xff]  ;;  %v359_v17 = vld [vmem:[%s564_s10] ss:$0 sm:$0xff] }
 0x186   :  { %v124_v18 = vpop.xlane.xlu0 %123 }
 0x187   :  { %v126_v23 = vmul.f32 0.03125, %v124_v18 }
 0x189   :  { %v128_v26 = vsub.f32 %v126_v23, %v127_v22 }
 0x18b   :  { %v130_v27 = vadd.f32 2.5e-06, %v128_v26 }
 0x18d   :  { %360 = vrsqrt.f32 %v130_v27  ;;  %vm137_vm3 = vweird.f32 %v130_v27 }
 0x193   :  { %v361_v28 = vpop.eup %360 }
 0x194   :  { %v132_v29 = vmul.f32 %v361_v28, %v130_v27  ;;  %vm138_vm2 = vweird.f32 %v361_v28 }
 0x195   :  { %vm139_vm4 = vmor %vm137_vm3, %vm138_vm2 }
 0x196   :  { %v133_v30 = vmul.f32 %v361_v28, %v132_v29 }
 0x198   :  { %v134_v31 = vmul.f32 0.5, %v133_v30 }
 0x19a   :  { %v135_v32 = vsub.f32 1.5, %v134_v31 }
 0x19c   :  { %v136_v33 = vmul.f32 %v361_v28, %v135_v32 }
 0x19e   :  { %v140_v36 = vsel %vm139_vm4, %v361_v28, %v136_v33 }
 0x19f   :  { %v141_v37 = vmul.f32 %v140_v36, %v129_v34 }
 0x1a1   :  { %v146_v39 = vmul.f32 %v354_v35, %v141_v37 }
 0x1a3   :  { %v151_v40 = vadd.f32 %v355_v38, %v146_v39 }
 0x1a5   :  { %178 = vmatpush.msra.mxu2 %v151_v40 }
 0x1a6   :  { %335 = vmatmul.msk.f32.vlgmr.msra.gmra.mxu2 %vm159_vm5, %v152_v41 }
 0x229   :  { %v180_v44 = vpop.f32.mrf.mxu2 }
 0x22a   :  { %v181_v45 = vadd.f32 %v180_v44, %v157_v43 }
 0x22c   :  { %337 = vmatmul.msk.f32.vlgmr.msra.gmra.mxu3 %vm94_vm1, %v181_v45 }
 0x2af   :  { %v213_v47 = vpop.f32.mrf.mxu3 }
 0x2b0   :  { %v214_v48 = vadd.f32 %v356_v46, %v213_v47 }
 0x2b2   :  { %v216_v49 = vsel %vm94_vm1, %v214_v48, 0.0  ;;  %v219_v50 = vmul.f32 %v214_v48, %v214_v48 }
 0x2b3   :  { %217 = vadd.xlane.f32.xlu1 %v216_v49 }
 0x2b4   :  { %v220_v51 = vsel %vm94_vm1, %v219_v50, 0.0 }
 0x2b5   :  { %221 = vadd.xlane.f32.xlu2 %v220_v51 }
 0x2cd   :  { %258 = vperm.xlu2 %350, %v341_v55  }
 0x326   :  { %v218_v52 = vpop.xlane.xlu1 %217 }
 0x327   :  { %v223_v53 = vmul.f32 0.03125, %v218_v52 }
 0x328   :  { %v222_v54 = vpop.xlane.xlu2 %221 }
 0x329   :  { %v225_v58 = vmul.f32 %v223_v53, %v223_v53  ;;  %v224_v59 = vmul.f32 0.03125, %v222_v54  ;;  %v227_v5 = vsub.f32 %v214_v48, %v223_v53 }
 0x32b   :  { %v226_v61 = vsub.f32 %v224_v59, %v225_v58 }
 0x32d   :  { %v228_v62 = vadd.f32 2.5e-06, %v226_v61 }
 0x32f   :  { %362 = vrsqrt.f32 %v228_v62  ;;  %vm235_vm7 = vweird.f32 %v228_v62 }
 0x330   :  { %v259_v14 = vpop.permute.xlu2 %258 }
 0x335   :  { %v363_v63 = vpop.eup %362 }
 0x336   :  { %v230_v0 = vmul.f32 %v363_v63, %v228_v62  ;;  %vm236_vm6 = vweird.f32 %v363_v63 }
 0x337   :  { %vm237_vm8 = vmor %vm235_vm7, %vm236_vm6 }
 0x338   :  { %v231_v1 = vmul.f32 %v363_v63, %v230_v0 }
 0x33a   :  { %v232_v2 = vmul.f32 0.5, %v231_v1 }
 0x33c   :  { %v233_v3 = vsub.f32 1.5, %v232_v2 }
 0x33e   :  { %v234_v4 = vmul.f32 %v363_v63, %v233_v3 }
 0x340   :  { %v238_v7 = vsel %vm237_vm8, %v363_v63, %v234_v4 }
 0x341   :  { %v239_v8 = vmul.f32 %v238_v7, %v227_v5 }
 0x343   :  { %v245_v10 = vmul.f32 %v357_v6, %v239_v8 }
 0x345   :  { %v251_v11 = vadd.f32 %v358_v9, %v245_v10 }
 0x347   :  { %279 = vmatpush.msrb.mxu2 %v251_v11 }
 0x348   :  { %342 = vmatmul.msk.f32.vlgmr.msrb.gmra.mxu2 %vm159_vm5, %v340_v12 }
 0x3cb   :  { %v281_v15 = vpop.f32.mrf.mxu2 }
 0x3cc   :  { %v282_v16 = vadd.f32 %v281_v15, %v259_v14 }
 0x3ce   :  { %343 = vmatmul.msk.f32.vlgmr.msrb.gmra.mxu0 %vm94_vm1, %v282_v16 }
 0x44b   :  { %v312_v18 = vpop.f32.mrf.mxu0 }
 0x44c   :  { %v313_v19 = vadd.f32 %v359_v17, %v312_v18 }
 0x44e   :  { %315 = vst.msk [vmem:[#allocation5] sm:$0xff] %vm159_vm5, %v313_v19 }
 0x44f   :  { %326 = dma.vmem_to_hbm [thread:$0]  %s322_s13, 128, %s324_s15, [#allocation4]  }
 0x450   :  { %414 = dma.done.wait [#allocation4], 128  }
 0x451   :  { %415 = vsyncadd [#allocation4], 4294967168 }
 0x452   :  { %331 = vsyncpa [#allocation3], 1 }
 0x453   :  { %332 = vsyncpa [#allocation4], 1 }

</bundles_post_ra>
